<compile_context>
chip_gen: v5e
topology: v5e:2x2
jax: 0.10.0
libtpu: 0.0.40
codegen_flags: <defaults>
</compile_context>

<pallas_src>
import functools

import jax
import jax.numpy as jnp
from jax import lax
from jax.experimental import pallas as pl
from jax.experimental.pallas import tpu as pltpu


# ---------------------------------------------------------------------------
# Pallas kernel: bias + gate + 1x1 convs + residual, fully fused
# ---------------------------------------------------------------------------
def _sigmoid(x):
    # sigmoid(x) = 0.5 * (tanh(0.5*x) + 1): a single EUP transcendental.
    return 0.5 * (jnp.tanh(0.5 * x) + 1.0)


def _fused_gate_kernel(hv_ref, hh_ref, *rest, residual):
    if residual:
        xh_ref, bv_ref, bo_ref, wv_ref, wr_ref, br_ref, ov_ref, oh_ref = rest
    else:
        bv_ref, bo_ref, wv_ref, wr_ref, br_ref, ov_ref, oh_ref = rest
        xh_ref = None

    C = ov_ref.shape[1]
    f32 = jnp.float32

    hv = hv_ref[0].astype(f32)                                   # (2C, T)

    # --- vertical-stack gate: out_v = tanh(a) * sigmoid(b) ----------------
    zv = hv + bv_ref[0]                                          # + class-cond bias
    ov_ref[0] = (jnp.tanh(zv[:C]) * _sigmoid(zv[C:])).astype(ov_ref.dtype)

    # --- vert_to_horiz 1x1 conv == channel matmul on the MXU --------------
    v2h = jnp.dot(wv_ref[...], hv, preferred_element_type=f32)   # (2C, T)
    z = v2h + hh_ref[0].astype(f32) + bo_ref[0]                  # + h_horiz + bias
    out = jnp.tanh(z[:C]) * _sigmoid(z[C:])                      # (C, T)

    # --- horiz_resid 1x1 conv (+ residual) ---------------------------------
    oh = jnp.dot(wr_ref[...], out, preferred_element_type=f32) + br_ref[...]
    if residual:
        oh = oh + xh_ref[0].astype(f32)
    oh_ref[0] = oh.astype(oh_ref.dtype)


def _pick_tile(hw, c, itemsize, batch):
    """Largest lane-dense spatial tile (multiple of 128, capped at 1024) whose
    double-buffered working set fits a generation-safe VMEM budget, preferring
    enough grid steps (B * n_t >= 4) to keep both v7x TensorCores busy."""
    if hw <= 128:
        return hw  # full-extent last dim is always a legal block

    def working_set(t):
        tiles = 7 * c * t            # hv(2C) + hh(2C) + xh(C) + out_v(C) + out_h(C)
        weights = 5 * c * c + 5 * c  # v2h/hres weights + the three bias blocks
        return 2 * itemsize * (tiles + weights)   # x2: double-buffered

    budget = 14 * 1024 * 1024        # below v5e's 16 MiB default scoped-VMEM limit
    candidates = [t for t in (1024, 512, 256, 128) if t <= hw]
    fitting = [t for t in candidates if working_set(t) <= budget] or [128]
    for t in fitting:                # largest tile that still yields >= 4 grid steps
        if batch * ((hw + t - 1) // t) >= 4:
            return t
    return fitting[-1]               # tiny images: take the smallest (most steps)


def fused_gate_horiz(h_vert, h_horiz, x_h, bias_v, bias_out, w_v2h, w_hres, b_hres,
                     *, residual=True):
    """Returns (out_v, out_h) of shapes (B, C, H, W)."""
    B, C2, H, W = h_vert.shape
    assert C2 % 2 == 0, "channel dim must be even for chunk(2, dim=1)"
    C = C2 // 2
    HW = H * W
    itemsize = jnp.dtype(h_vert.dtype).itemsize
    T = _pick_tile(HW, C, itemsize, B)
    n_t = (HW + T - 1) // T          # ragged last tile is masked by Pallas

    hv = h_vert.reshape(B, C2, HW)
    hh = h_horiz.reshape(B, C2, HW)
    bv = bias_v.astype(jnp.float32).reshape(B, C2, 1)
    bo = bias_out.astype(jnp.float32).reshape(B, C2, 1)
    wv = w_v2h.reshape(C2, C2).astype(jnp.float32)
    wr = w_hres.reshape(C, C).astype(jnp.float32)
    br = b_hres.astype(jnp.float32).reshape(C, 1)

    in_specs = [
        pl.BlockSpec((1, C2, T), lambda b, t: (b, 0, t)),   # h_vert tile
        pl.BlockSpec((1, C2, T), lambda b, t: (b, 0, t)),   # h_horiz tile
    ]
    inputs = [hv, hh]
    if residual:
        in_specs.append(pl.BlockSpec((1, C, T), lambda b, t: (b, 0, t)))  # x_h tile
        inputs.append(x_h.reshape(B, C, HW))
    in_specs += [
        pl.BlockSpec((1, C2, 1), lambda b, t: (b, 0, 0)),   # class-cond bias (vert)
        pl.BlockSpec((1, C2, 1), lambda b, t: (b, 0, 0)),   # class-cond + v2h bias
        pl.BlockSpec((C2, C2), lambda b, t: (0, 0)),        # v2h weight (resident)
        pl.BlockSpec((C, C), lambda b, t: (0, 0)),          # hres weight (resident)
        pl.BlockSpec((C, 1), lambda b, t: (0, 0)),          # hres bias
    ]
    inputs += [bv, bo, wv, wr, br]

    out_v, out_h = pl.pallas_call(
        functools.partial(_fused_gate_kernel, residual=residual),
        out_shape=(jax.ShapeDtypeStruct((B, C, HW), h_vert.dtype),
                   jax.ShapeDtypeStruct((B, C, HW), h_vert.dtype)),
        grid_spec=pltpu.PrefetchScalarGridSpec(
            num_scalar_prefetch=0,
            grid=(B, n_t),
            in_specs=in_specs,
            out_specs=[pl.BlockSpec((1, C, T), lambda b, t: (b, 0, t)),
                       pl.BlockSpec((1, C, T), lambda b, t: (b, 0, t))],
        ),
        compiler_params=pltpu.CompilerParams(
            dimension_semantics=("parallel", "parallel"),
            vmem_limit_bytes=32 * 1024 * 1024,
        ),
    )(*inputs)

    return out_v.reshape(B, C, H, W), out_h.reshape(B, C, H, W)


# ---------------------------------------------------------------------------
# GatedMaskedConv2d forward (spatial convs / embedding in XLA, rest in Pallas)
# ---------------------------------------------------------------------------
def _conv2d_nchw(x, w, b, padding):
    # TODO(synk): the spatial masked convolutions and the class-embedding
    # lookup stay in XLA; all per-pixel channel math runs in the Pallas kernel.
    out = lax.conv_general_dilated(
        x, w, window_strides=(1, 1), padding=padding,
        dimension_numbers=("NCHW", "OIHW", "NCHW"),
        precision=lax.Precision.HIGHEST)
    return out + b[None, :, None, None]


def _gate_ref(z):
    a, b = jnp.split(z, 2, axis=1)
    return jnp.tanh(a) * jax.nn.sigmoid(b)


def init_gated_masked_conv2d(key, dim, kernel, n_classes=10):
    assert kernel % 2 == 1, "Kernel size must be odd"
    k = kernel
    keys = jax.random.split(key, 9)

    def conv_init(kw, kb, out_c, in_c, kh, kwd):
        fan_in = in_c * kh * kwd
        bound = 1.0 / (fan_in ** 0.5)
        w = jax.random.uniform(kw, (out_c, in_c, kh, kwd), jnp.float32, -bound, bound)
        b = jax.random.uniform(kb, (out_c,), jnp.float32, -bound, bound)
        return w, b

    vert_w, vert_b = conv_init(keys[0], keys[1], 2 * dim, dim, k // 2 + 1, k)
    v2h_w, v2h_b = conv_init(keys[2], keys[3], 2 * dim, 2 * dim, 1, 1)
    horiz_w, horiz_b = conv_init(keys[4], keys[5], 2 * dim, dim, 1, k // 2 + 1)
    hres_w, hres_b = conv_init(keys[6], keys[7], dim, dim, 1, 1)
    embed = jax.random.normal(keys[8], (n_classes, 2 * dim), dtype=jnp.float32)
    return dict(vert_w=vert_w, vert_b=vert_b, v2h_w=v2h_w, v2h_b=v2h_b,
                horiz_w=horiz_w, horiz_b=horiz_b, hres_w=hres_w, hres_b=hres_b,
                embed=embed)


def gated_masked_conv2d(params, x_v, x_h, h, *, mask_type, kernel, residual=True,
                        use_pallas=True):
    k = kernel
    vert_w = params["vert_w"]
    horiz_w = params["horiz_w"]
    if mask_type == "A":
        # make_causal(): zero last row of vert kernel / last column of horiz kernel
        vert_w = vert_w.at[:, :, -1].set(0.0)
        horiz_w = horiz_w.at[:, :, :, -1].set(0.0)

    h_emb = params["embed"][h]                                       # (B, 2*dim)

    h_vert = _conv2d_nchw(x_v, vert_w, params["vert_b"],
                          [(k // 2, k // 2), (k // 2, k // 2)])
    h_vert = h_vert[:, :, : x_v.shape[-1], :]     # PyTorch crop (assumes H == W)

    h_horiz = _conv2d_nchw(x_h, horiz_w, params["horiz_b"],
                           [(0, 0), (k // 2, k // 2)])
    h_horiz = h_horiz[:, :, :, : x_h.shape[-2]]   # PyTorch crop (assumes H == W)

    if use_pallas:
        # Fold the v2h conv bias into the class-conditional bias of the 2nd gate.
        bias_out = h_emb + params["v2h_b"][None, :]
        return fused_gate_horiz(h_vert, h_horiz, x_h, h_emb, bias_out,
                                params["v2h_w"], params["hres_w"], params["hres_b"],
                                residual=residual)

    # Pure-XLA reference path.
    out_v = _gate_ref(h_vert + h_emb[:, :, None, None])
    v2h = _conv2d_nchw(h_vert, params["v2h_w"], params["v2h_b"], [(0, 0), (0, 0)])
    out = _gate_ref(v2h + h_horiz + h_emb[:, :, None, None])
    out_h = _conv2d_nchw(out, params["hres_w"], params["hres_b"], [(0, 0), (0, 0)])
    if residual:
        out_h = out_h + x_h
    return out_v, out_h


if __name__ == "__main__":
    key = jax.random.PRNGKey(0)
    kp, kv, kh, kc = jax.random.split(key, 4)

    B, dim, H, W, kernel, n_classes = 2, 8, 16, 16, 3, 10
    params = init_gated_masked_conv2d(kp, dim, kernel, n_classes)
    x_v = jax.random.normal(kv, (B, dim, H, W), dtype=jnp.float32)
    x_h = jax.random.normal(kh, (B, dim, H, W), dtype=jnp.float32)
    h = jax.random.randint(kc, (B,), 0, n_classes, dtype=jnp.int32)

    fwd = functools.partial(gated_masked_conv2d, mask_type="A", kernel=kernel,
                            residual=True)

    out_v, out_h = jax.block_until_ready(fwd(params, x_v, x_h, h, use_pallas=True))
    ref_v, ref_h = jax.block_until_ready(fwd(params, x_v, x_h, h, use_pallas=False))

    assert out_v.shape == (B, dim, H, W) and out_h.shape == (B, dim, H, W)
    # In-kernel MXU f32 matmuls vs HIGHEST-precision XLA convs: ~1e-6 drift.
    assert jnp.allclose(out_v, ref_v, atol=1e-4, rtol=1e-4), \
        float(jnp.max(jnp.abs(out_v - ref_v)))
    assert jnp.allclose(out_h, ref_h, atol=1e-4, rtol=1e-4), \
        float(jnp.max(jnp.abs(out_h - ref_h)))

    print("KERNEL_OK")
</pallas_src>

<mosaic_0001>
module attributes {stable_mosaic.version = 11 : i64} {
  func.func @_fused_gate_kernel(%arg0: i32, %arg1: i32, %arg2: memref<1x16x128xf32, #tpu.memory_space<vmem>>, %arg3: memref<1x16x128xf32, #tpu.memory_space<vmem>>, %arg4: memref<1x8x128xf32, #tpu.memory_space<vmem>>, %arg5: memref<1x16x1xf32, #tpu.memory_space<vmem>>, %arg6: memref<1x16x1xf32, #tpu.memory_space<vmem>>, %arg7: memref<16x16xf32, #tpu.memory_space<vmem>>, %arg8: memref<8x8xf32, #tpu.memory_space<vmem>>, %arg9: memref<8x1xf32, #tpu.memory_space<vmem>>, %arg10: memref<1x8x128xf32, #tpu.memory_space<vmem>>, %arg11: memref<1x8x128xf32, #tpu.memory_space<vmem>>) attributes {dimension_semantics = [#tpu.dimension_semantics<parallel>, #tpu.dimension_semantics<parallel>], iteration_bounds = array<i64: 2, 2>, scalar_prefetch = 0 : i64, scratch_operands = 0 : i64, tpu.core_type = #tpu.core_type<tc>, window_params = [{transform_indices = @transform_0, window_bounds = array<i64: 1, 16, 128>}, {transform_indices = @transform_1, window_bounds = array<i64: 1, 16, 128>}, {transform_indices = @transform_2, window_bounds = array<i64: 1, 8, 128>}, {transform_indices = @transform_3, window_bounds = array<i64: 1, 16, 1>}, {transform_indices = @transform_4, window_bounds = array<i64: 1, 16, 1>}, {pipeline_mode = #tpu.pipeline_mode<synchronous>, transform_indices = @transform_5, window_bounds = array<i64: 16, 16>}, {pipeline_mode = #tpu.pipeline_mode<synchronous>, transform_indices = @transform_6, window_bounds = array<i64: 8, 8>}, {pipeline_mode = #tpu.pipeline_mode<synchronous>, transform_indices = @transform_7, window_bounds = array<i64: 8, 1>}, {transform_indices = @transform_8, window_bounds = array<i64: 1, 8, 128>}, {transform_indices = @transform_9, window_bounds = array<i64: 1, 8, 128>}]} {
    %c0 = arith.constant 0 : index
    %c0_0 = arith.constant 0 : index
    %c0_1 = arith.constant 0 : index
    %0 = vector.load %arg2[%c0, %c0_0, %c0_1] : memref<1x16x128xf32, #tpu.memory_space<vmem>>, vector<1x16x128xf32>
    %1 = vector.shape_cast %0 : vector<1x16x128xf32> to vector<16x128xf32>
    %c0_2 = arith.constant 0 : index
    %c0_3 = arith.constant 0 : index
    %c0_4 = arith.constant 0 : index
    %2 = vector.load %arg5[%c0_2, %c0_3, %c0_4] : memref<1x16x1xf32, #tpu.memory_space<vmem>>, vector<1x16x1xf32>
    %3 = vector.shape_cast %2 : vector<1x16x1xf32> to vector<16x1xf32>
    %4 = vector.broadcast %3 : vector<16x1xf32> to vector<16x128xf32>
    %5 = arith.addf %1, %4 : vector<16x128xf32>
    %6 = vector.extract_strided_slice %5 {offsets = [0, 0], sizes = [8, 128], strides = [1, 1]} : vector<16x128xf32> to vector<8x128xf32>
    %7 = math.tanh %6 : vector<8x128xf32>
    %8 = vector.extract_strided_slice %5 {offsets = [8, 0], sizes = [8, 128], strides = [1, 1]} : vector<16x128xf32> to vector<8x128xf32>
    %cst = arith.constant 5.000000e-01 : f32
    %9 = vector.broadcast %cst : f32 to vector<8x128xf32>
    %10 = arith.mulf %9, %8 : vector<8x128xf32>
    %11 = math.tanh %10 : vector<8x128xf32>
    %cst_5 = arith.constant 1.000000e+00 : f32
    %12 = vector.broadcast %cst_5 : f32 to vector<8x128xf32>
    %13 = arith.addf %11, %12 : vector<8x128xf32>
    %cst_6 = arith.constant 5.000000e-01 : f32
    %14 = vector.broadcast %cst_6 : f32 to vector<8x128xf32>
    %15 = arith.mulf %14, %13 : vector<8x128xf32>
    %16 = arith.mulf %7, %15 : vector<8x128xf32>
    %c0_7 = arith.constant 0 : index
    %c0_8 = arith.constant 0 : index
    %c0_9 = arith.constant 0 : index
    %17 = vector.load %arg10[%c0_7, %c0_8, %c0_9] : memref<1x8x128xf32, #tpu.memory_space<vmem>>, vector<1x8x128xf32>
    %18 = vector.shape_cast %17 : vector<1x8x128xf32> to vector<8x128xf32>
    %19 = vector.shape_cast %16 : vector<8x128xf32> to vector<1x8x128xf32>
    tpu.vector_store %arg10[%c0_7, %c0_8, %c0_9], %19 {strides = array<i32>} : memref<1x8x128xf32, #tpu.memory_space<vmem>>, vector<1x8x128xf32>,
    %c0_10 = arith.constant 0 : index
    %c0_11 = arith.constant 0 : index
    %20 = vector.load %arg7[%c0_10, %c0_11] : memref<16x16xf32, #tpu.memory_space<vmem>>, vector<16x16xf32>
    %cst_12 = arith.constant dense<0.000000e+00> : vector<16x128xf32>
    %21 = tpu.matmul %20, %1, %cst_12 {dimension_numbers = #tpu.dot_dimension_numbers<[1], [0], [0], [1], [0, 0, 1, 1], [], []>} : vector<16x16xf32>, vector<16x128xf32>, vector<16x128xf32> -> vector<16x128xf32>
    %c0_13 = arith.constant 0 : index
    %c0_14 = arith.constant 0 : index
    %c0_15 = arith.constant 0 : index
    %22 = vector.load %arg3[%c0_13, %c0_14, %c0_15] : memref<1x16x128xf32, #tpu.memory_space<vmem>>, vector<1x16x128xf32>
    %23 = vector.shape_cast %22 : vector<1x16x128xf32> to vector<16x128xf32>
    %24 = arith.addf %21, %23 : vector<16x128xf32>
    %c0_16 = arith.constant 0 : index
    %c0_17 = arith.constant 0 : index
    %c0_18 = arith.constant 0 : index
    %25 = vector.load %arg6[%c0_16, %c0_17, %c0_18] : memref<1x16x1xf32, #tpu.memory_space<vmem>>, vector<1x16x1xf32>
    %26 = vector.shape_cast %25 : vector<1x16x1xf32> to vector<16x1xf32>
    %27 = vector.broadcast %26 : vector<16x1xf32> to vector<16x128xf32>
    %28 = arith.addf %24, %27 : vector<16x128xf32>
    %29 = vector.extract_strided_slice %28 {offsets = [0, 0], sizes = [8, 128], strides = [1, 1]} : vector<16x128xf32> to vector<8x128xf32>
    %30 = math.tanh %29 : vector<8x128xf32>
    %31 = vector.extract_strided_slice %28 {offsets = [8, 0], sizes = [8, 128], strides = [1, 1]} : vector<16x128xf32> to vector<8x128xf32>
    %cst_19 = arith.constant 5.000000e-01 : f32
    %32 = vector.broadcast %cst_19 : f32 to vector<8x128xf32>
    %33 = arith.mulf %32, %31 : vector<8x128xf32>
    %34 = math.tanh %33 : vector<8x128xf32>
    %cst_20 = arith.constant 1.000000e+00 : f32
    %35 = vector.broadcast %cst_20 : f32 to vector<8x128xf32>
    %36 = arith.addf %34, %35 : vector<8x128xf32>
    %cst_21 = arith.constant 5.000000e-01 : f32
    %37 = vector.broadcast %cst_21 : f32 to vector<8x128xf32>
    %38 = arith.mulf %37, %36 : vector<8x128xf32>
    %39 = arith.mulf %30, %38 : vector<8x128xf32>
    %c0_22 = arith.constant 0 : index
    %c0_23 = arith.constant 0 : index
    %40 = vector.load %arg8[%c0_22, %c0_23] : memref<8x8xf32, #tpu.memory_space<vmem>>, vector<8x8xf32>
    %cst_24 = arith.constant dense<0.000000e+00> : vector<8x128xf32>
    %41 = tpu.matmul %40, %39, %cst_24 {dimension_numbers = #tpu.dot_dimension_numbers<[1], [0], [0], [1], [0, 0, 1, 1], [], []>} : vector<8x8xf32>, vector<8x128xf32>, vector<8x128xf32> -> vector<8x128xf32>
    %c0_25 = arith.constant 0 : index
    %c0_26 = arith.constant 0 : index
    %42 = vector.load %arg9[%c0_25, %c0_26] : memref<8x1xf32, #tpu.memory_space<vmem>>, vector<8x1xf32>
    %43 = vector.broadcast %42 : vector<8x1xf32> to vector<8x128xf32>
    %44 = arith.addf %41, %43 : vector<8x128xf32>
    %c0_27 = arith.constant 0 : index
    %c0_28 = arith.constant 0 : index
    %c0_29 = arith.constant 0 : index
    %45 = vector.load %arg4[%c0_27, %c0_28, %c0_29] : memref<1x8x128xf32, #tpu.memory_space<vmem>>, vector<1x8x128xf32>
    %46 = vector.shape_cast %45 : vector<1x8x128xf32> to vector<8x128xf32>
    %47 = arith.addf %44, %46 : vector<8x128xf32>
    %c0_30 = arith.constant 0 : index
    %c0_31 = arith.constant 0 : index
    %c0_32 = arith.constant 0 : index
    %48 = vector.load %arg11[%c0_30, %c0_31, %c0_32] : memref<1x8x128xf32, #tpu.memory_space<vmem>>, vector<1x8x128xf32>
    %49 = vector.shape_cast %48 : vector<1x8x128xf32> to vector<8x128xf32>
    %50 = vector.shape_cast %47 : vector<8x128xf32> to vector<1x8x128xf32>
    tpu.vector_store %arg11[%c0_30, %c0_31, %c0_32], %50 {strides = array<i32>} : memref<1x8x128xf32, #tpu.memory_space<vmem>>, vector<1x8x128xf32>,
    return
  }
  func.func @transform_0(%arg0: i32, %arg1: i32) -> (i32, i32, i32) {
    %c0_i32 = arith.constant 0 : i32
    %c0_i32_0 = arith.constant 0 : i32
    return %arg0, %c0_i32, %arg1 : i32, i32, i32
  }
  func.func @transform_1(%arg0: i32, %arg1: i32) -> (i32, i32, i32) {
    %c0_i32 = arith.constant 0 : i32
    %c0_i32_0 = arith.constant 0 : i32
    return %arg0, %c0_i32, %arg1 : i32, i32, i32
  }
  func.func @transform_2(%arg0: i32, %arg1: i32) -> (i32, i32, i32) {
    %c0_i32 = arith.constant 0 : i32
    %c0_i32_0 = arith.constant 0 : i32
    return %arg0, %c0_i32, %arg1 : i32, i32, i32
  }
  func.func @transform_3(%arg0: i32, %arg1: i32) -> (i32, i32, i32) {
    %c0_i32 = arith.constant 0 : i32
    %c0_i32_0 = arith.constant 0 : i32
    %c0_i32_1 = arith.constant 0 : i32
    return %arg0, %c0_i32, %c0_i32_0 : i32, i32, i32
  }
  func.func @transform_4(%arg0: i32, %arg1: i32) -> (i32, i32, i32) {
    %c0_i32 = arith.constant 0 : i32
    %c0_i32_0 = arith.constant 0 : i32
    %c0_i32_1 = arith.constant 0 : i32
    return %arg0, %c0_i32, %c0_i32_0 : i32, i32, i32
  }
  func.func @transform_5(%arg0: i32, %arg1: i32) -> (i32, i32) {
    %c0_i32 = arith.constant 0 : i32
    %c0_i32_0 = arith.constant 0 : i32
    %c0_i32_1 = arith.constant 0 : i32
    return %c0_i32, %c0_i32_0 : i32, i32
  }
  func.func @transform_6(%arg0: i32, %arg1: i32) -> (i32, i32) {
    %c0_i32 = arith.constant 0 : i32
    %c0_i32_0 = arith.constant 0 : i32
    %c0_i32_1 = arith.constant 0 : i32
    return %c0_i32, %c0_i32_0 : i32, i32
  }
  func.func @transform_7(%arg0: i32, %arg1: i32) -> (i32, i32) {
    %c0_i32 = arith.constant 0 : i32
    %c0_i32_0 = arith.constant 0 : i32
    %c0_i32_1 = arith.constant 0 : i32
    return %c0_i32, %c0_i32_0 : i32, i32
  }
  func.func @transform_8(%arg0: i32, %arg1: i32) -> (i32, i32, i32) {
    %c0_i32 = arith.constant 0 : i32
    %c0_i32_0 = arith.constant 0 : i32
    return %arg0, %c0_i32, %arg1 : i32, i32, i32
  }
  func.func @transform_9(%arg0: i32, %arg1: i32) -> (i32, i32, i32) {
    %c0_i32 = arith.constant 0 : i32
    %c0_i32_0 = arith.constant 0 : i32
    return %arg0, %c0_i32, %arg1 : i32, i32, i32
  }
}

</mosaic_0001>

<bundles_post_ra>
// kernel: tpu_custom_call.1
= control target key start
LH: loop header
LB: loop body
LE: loop exit
PB: predicated region body
PF: predicated region fallthrough
CT: control target
= control target key end

     0   :  { %s1557_s0 = inlined_call_operand.vmem [shape: f32[2,16,256], index: 0, kind: input, shape index: {}]   ;;  %s1558_s1 = inlined_call_operand.hbm [shape: f32[2,16,256], index: 1, kind: input, shape index: {}]   ;;  %s1559_s2 = inlined_call_operand.hbm [shape: f32[2,8,256], index: 2, kind: input, shape index: {}]   ;;  %s1560_s3 = inlined_call_operand.vmem [shape: f32[2,16,1], index: 3, kind: input, shape index: {}]   ;;  %s1561_s4 = inlined_call_operand.vmem [shape: f32[2,16,1], index: 4, kind: input, shape index: {}]   ;;  %s1562_s5 = inlined_call_operand.hbm [shape: f32[16,16], index: 5, kind: input, shape index: {}]   ;;  %s1563_s6 = inlined_call_operand.vmem [shape: f32[8,8], index: 6, kind: input, shape index: {}]   ;;  %s1564_s7 = inlined_call_operand.vmem [shape: f32[8,1], index: 7, kind: input, shape index: {}]   ;;  %s1565_s8 = inlined_call_operand.hbm [shape: f32[2,8,256], index: 8, kind: output, shape index: {0}]   ;;  %s1566_s9 = inlined_call_operand.hbm [shape: f32[2,8,256], index: 9, kind: output, shape index: {1}]  }
   0x1   :  { %1576 = sst [smem:[#allocation25_spill]] %s1557_s0 }
   0x2   :  { %1577 = sst [smem:[#allocation26_spill]] %s1560_s3 }
   0x3   :  { %1578 = sst [smem:[#allocation27_spill]] %s1562_s5 }
   0x4   :  { %1579 = sst [smem:[#allocation28_spill]] %s1563_s6 }
   0x5   :  { %1580 = sst [smem:[#allocation29_spill]] %s1564_s7 }
   0x6   :  { %1581 = sst [smem:[#allocation30_spill]] %s1565_s8 }
   0x7   :  { %1582 = sst [smem:[#allocation31_spill]] %s1566_s9 }
   0x8   :  { %15 = vsyncpa [#allocation4], 0 }
   0x9   :  { %17 = vsyncpa [#allocation4 + $0x1], 0 }
   0xa   :  { %18 = vsyncpa [#allocation7], 0 }
   0xb   :  { %20 = vsyncpa [#allocation7 + $0x1], 0 }
   0xc   :  { %21 = vsyncpa [#allocation5], 0 }
   0xd   :  { %23 = vsyncpa [#allocation5 + $0x1], 0 }
   0xe   :  { %24 = vsyncpa [#allocation11], 0 }
   0xf   :  { %26 = vsyncpa [#allocation11 + $0x1], 0  ;;  %s1324_s30 = smov 0   ;;  %s1326_s10 = smov 0  }
  0x10   :  { %s1328_s11 = smov 0   ;;  %s1330_s12 = smov 0  }
  0x11   :  { %s1332_s13 = smov 0   ;;  %s1334_s14 = smov 0  }
  0x12   :  { %s1336_s15 = smov 0   ;;  %s1338_s16 = smov 0  }
  0x13 LB: > { %1583 = sst [smem:[#allocation17_spill]] %s1237_s30  ;;  %s1365_s17 = sadd.s32 4294967295, %s1265_s16   ;;  %s1265_s16 = sphi %s1338_s16, %s32_s16   ;;  %s1261_s15 = sphi %s1336_s15, %s1616_s15   ;;  %s1257_s14 = sphi %s1334_s14, %s1615_s14   ;;  %s1253_s13 = sphi %s1332_s13, %s1614_s13   ;;  %s1249_s12 = sphi %s1330_s12, %s1613_s12   ;;  %s1245_s11 = sphi %s1328_s11, %s1608_s11   ;;  %s1241_s10 = sphi %s1326_s10, %s1612_s10   ;;  %s1237_s30 = sphi %s1324_s30, %s1611_s30  }
  0x14   : > { %1584 = sst [smem:[#allocation18_spill]] %s1245_s11  ;;  %s894_s18 = sadd.s32 4294967294, %s1265_s16  }
  0x15   : > { %1585 = sst [smem:[#allocation19_spill]] %s1249_s12  ;;  %s41_s19 = sadd.s32 1, %s1257_s14 }
  0x16   : > { %s44_s20 = sadd.s32 1, %s1261_s15  ;;  %p42_p0 = scmp.ge.s32.totalorder %s41_s19, 2 }
  0x17   : > { %s53_s21 = sadd.s32 1, %s1245_s11  ;;  %p60_p1 = scmp.ne.s32.totalorder %s1245_s11, %s1241_s10 }
  0x18   : > { %p61_p2 = scmp.eq.s32.totalorder %s1265_s16, 0  ;;  %s1618_s19 = smov (%p42_p0, %s41_s19), 0 }
  0x19   : > { %1586 = sst [smem:[#allocation20_spill]] %s1618_s19  ;;  %s1620_s20 = smov (!%p42_p0, %s44_s20), %s1261_s15 }
  0x1a   : > { %s49_s22 = ssub.s32 %s1257_s14, %s1618_s19  ;;  %p1379_p3 = por %p61_p2, %p60_p1 }
  0x1b   : > { %p46_p4 = scmp.ge.s32.totalorder %s1620_s20, 2  ;;  %p94_p5 = scmp.ne.s32.totalorder %s1241_s10, %s1237_s30 }
  0x1c   : > { %p95_p6 = scmp.eq.s32.totalorder %s1365_s17, 0  ;;  %p263_p7 = scmp.eq.s32.totalorder %s1365_s17, 3 }
  0x1d   : > { %s1622_s20 = smov (%p46_p4, %s1620_s20), 0  ;;  %p269_p10 = scmp.eq.s32.totalorder %s894_s18, 3 }
  0x1e   : > { %1588 = sst [smem:[#allocation21_spill]] %s1622_s20  ;;  %p1391_p8 = por %p95_p6, %p94_p5 }
  0x1f   : > { %p1395_p9 = por %p263_p7, %p60_p1  ;;  %s48_s26 = ssub.s32 %s1261_s15, %s1622_s20 }
  0x20   : > { %s50_s27 = sor.u32 %s49_s22, %s48_s26  ;;  %p895_p11 = scmp.ge.s32.totalorder %s1265_s16, 1 }
  0x21   : > { %s1590_s25 = scalar_select %p1395_p9, 1, 0 }
  0x22   : > { %p51_p12 = scmp.eq.s32.totalorder %s50_s27, 0  ;;  %p1402_p13 = por %p269_p10, %p94_p5 }
  0x23   : > { %1591 = sst [smem:[#allocation22_spill]] %s1590_s25  ;;  %p304_p0 = scmp.lt.s32.totalorder %s1265_s16, 5 }
  0x24   : > { %s1592_s28 = scalar_select %p1402_p13, 1, 0 }
  0x25   : > { %s1408_s29 = scalar_select %p51_p12, %s1245_s11, %s53_s21  }
  0x26   : > { %1593 = sst [smem:[#allocation23_spill]] %s1592_s28  ;;  %p1410_p2 = pnand %p895_p11, %p304_p0 }
  0x27   : > { %1594 = sst [smem:[#allocation24_spill]] %s1408_s29  ;;  %s1267_s18 = smov [#allocation8]  }
  0x28   : > { %s1596_s5 = sld [smem:[#allocation27_spill]]  ;;  %p945_p1 = pneg %p1410_p2 }
  0x29   : > { %s317_s22 = sshll.u32 %s1267_s18, 4  ;;  %s1268_s26 = smov 128   ;;  %s318_s22 = int_to_ptr.vmem [resolvable:$true] %s317_s22 }
  0x2a   : > { %p946_p4 = pnand %p945_p1, %p95_p6  ;;  %s1269_s21 = smov 8  }
  0x2b   : > { %p897_p5 = scmp.ge.s32.totalorder %s1265_s16, 4 }
  0x2d   : > { %333 = sbr.rel (%p897_p5) target bundleno = 76 (0x4c), region = 28 }
  0x2e   : > { %s315_s20 = sshll.u32 %s1596_s5, 4  ;;  %s316_s20 = int_to_ptr.hbm [resolvable:$true] %s315_s20 }
  0x2f   : > { %948 = dma.hbm_to_vmem [thread:$0]  (!%p946_p4), %s316_s20, 256, %s318_s22, [#allocation7], %s1268_s26, %s1268_s26, %s1269_s21  }
  0x32   : > { %336 = sbr.rel (!%p1379_p3) target bundleno = 62 (0x3e), region = 32  ;;  %s338_s9 = sand.u32 (%p1379_p3), 1, %s1245_s11  }
  0x33   : > { %s899_s30 = sshll.u32 (%p1379_p3), %s1261_s15, 2  ;;  %s898_s27 = sshll.u32 (%p1379_p3), %s338_s9, 4 }
  0x34   : > { %s342_s5 = sadd.s32 (%p1379_p3), %s1257_s14, %s899_s30  ;;  %s1597_s0 = sld [smem:[#allocation25_spill]] (%p1379_p3) }
  0x35   : > { %s900_s18 = sshll.u32 (%p1379_p3), %s342_s5, 3  ;;  %s340_s20 = scalar_lea.vmem (%p1379_p3), [#allocation2], %s898_s27 }
  0x3a   : > { %s344_s25 = scalar_lea.vmem %s1597_s0, %s900_s18 }
  0x3b   : > { %v375_v0 = vld [vmem:[%s344_s25] sm:$0xff]  ;;  %v377_v1 = vld [vmem:[%s344_s25 + $0x10] sm:$0xff] }
  0x3c   : > { %376 = vst [vmem:[%s340_s20] sm:$0xff] %v375_v0 }
  0x3d   : > { %378 = vst [vmem:[%s340_s20 + $0x8] sm:$0xff] %v377_v1 }
  0x3e PF: > { %s385_s22 = sand.u32 1, %s1245_s11   ;;  %s902_s26 = sshll.u32 %s1261_s15, 2 }
  0x3f   : > { %s901_s21 = sshll.u32 %s385_s22, 4  ;;  %s393_s5 = sadd.s32 %s1257_s14, %s902_s26 }
  0x40   : > { %s903_s9 = sshll.u32 %s393_s5, 3  ;;  %s389_s28 = scalar_lea.vmem [#allocation3], %s901_s21 }
  0x41   : > { %s398_s29 = sshll.u32 %s389_s28, 4  ;;  %s395_s27 = scalar_lea.hbm %s1558_s1, %s903_s9  ;;  %s399_s29 = int_to_ptr.vmem [resolvable:$true] %s398_s29 }
  0x42   : > { %s396_s18 = sshll.u32 %s395_s27, 4  ;;  %s386_s20 = scalar_lea.sflag [#allocation4], %s385_s22  ;;  %s397_s18 = int_to_ptr.hbm [resolvable:$true] %s396_s18 }
  0x43   : > { %s1270_s0 = smov 256   ;;  %s1271_s11 = smov 128  }
  0x44   : > { %s1272_s8 = smov 8   ;;  %s408_s6 = sand.u32 1, %s1265_s16  }
  0x45   : > { %935 = dma.hbm_to_vmem [thread:$0]  (%p1379_p3), %s397_s18, 256, %s399_s29, %s386_s20, %s1270_s0, %s1271_s11, %s1272_s8  }
  0x46   : > { %s904_s26 = sshll.u32 %s385_s22, 3  ;;  %s905_s12 = sshll.u32 %s1261_s15, 1 }
  0x47   : > { %s416_s5 = sadd.s32 %s1257_s14, %s905_s12  ;;  %s412_s21 = scalar_lea.vmem [#allocation6], %s904_s26 }
  0x48   : > { %s422_s28 = sshll.u32 %s412_s21, 4  ;;  %s906_s7 = sshll.u32 %s416_s5, 3  ;;  %s423_s28 = int_to_ptr.vmem [resolvable:$true] %s422_s28 }
  0x49   : > { %s418_s9 = scalar_lea.hbm %s1559_s2, %s906_s7  ;;  %s409_s27 = scalar_lea.sflag [#allocation7], %s408_s6 }
  0x4a   : > { %s420_s25 = sshll.u32 %s418_s9, 4  ;;  %s421_s25 = int_to_ptr.hbm [resolvable:$true] %s420_s25 }
  0x4b   : > { %936 = dma.hbm_to_vmem [thread:$0]  (%p1379_p3), %s421_s25, 128, %s423_s28, %s409_s27  }
  0x4c PF: > { %447 = sbr.rel (%p1410_p2) target bundleno = 377 (0x179), region = 86  ;;  %s1449_s0 = sand.u32 (!%p1410_p2), 1, %s1241_s10  }
  0x4d   : > { %s908_s8 = sshll.u32 (!%p1410_p2), %s1449_s0, 4  ;;  %s457_s3 = scalar_lea.sflag (!%p1410_p2), [#allocation4], %s1449_s0 }
  0x4e   : > { %s452_s11 = scalar_lea.vmem (!%p1410_p2), [#allocation2], %s908_s8  ;;  %s1453_s7 = scalar_lea.vmem (!%p1410_p2), [#allocation3], %s908_s8 }
  0x51   : > { %1216 = dma.done.wait (%p1391_p8), %s457_s3, 256  }
  0x52   : > { %1218 = vsyncadd (%p1391_p8), %s457_s3, 4294967040  ;;  %s466_s6 = sand.u32 1, %s1365_s17   ;;  %s1461_s12 = sshll.u32 %s1449_s0, 3 }
  0x53   : > { %s467_s19 = scalar_lea.sflag [#allocation7], %s466_s6  ;;  %s470_s23 = scalar_lea.vmem [#allocation6], %s1461_s12 }
  0x54   : > { %1220 = dma.done.wait (%p1391_p8), %s467_s19, 128  }
  0x55   : > { %1222 = vsyncadd (%p1391_p8), %s467_s19, 4294967168 }
  0x56   : > { %1224 = dma.done.wait (%p95_p6), [#allocation7], 256  }
  0x57   : > { %1226 = vsyncadd (%p95_p6), [#allocation7], 4294967040  ;;  %p535_p3 = scmp.lt.s32.totalorder %s1253_s13, 1  ;;  %v1273_v2 = vmov 0   ;;  %v546_v3 = vld [vmem:[%s452_s11 + $0x8] sm:$0xff]  ;;  %v545_v4 = vld [vmem:[%s452_s11] sm:$0xff] }
  0x58   : > { %1030 = vset.pattern.permute.xlu0 %v1273_v2  ;;  %1031 = vset.pattern.permute.xlu1 %v1273_v2  ;;  %v569_v5 = vld [vmem:[#allocation8 + $0x8] sm:$0xff]  ;;  %vm572_vm0 = vcmask 130048   ;;  %v568_v6 = vld [vmem:[#allocation8] sm:$0xff]  ;;  %s1598_s5 = sld [smem:[#allocation26_spill]]  ;;  %vm629_vm1 = vcmask 64512   ;;  %s923_s3 = sshll.u32 %s1253_s13, 1 }
  0x59   : > { %s536_s22 = scalar_select %p535_p3, %s1253_s13, 1  ;;  %1032 = vset.pattern.permute.xlu2 %v1273_v2  ;;  %931 = vmatpush.msra.mxu2 %v546_v3  ;;  %v571_v13 = vld [vmem:[%s1453_s7 + $0x8] sm:$0xff]  ;;  %v570_v14 = vld [vmem:[%s1453_s7] sm:$0xff] }
  0x5a   : > { %593 = vmatpush.msra.mxu0 %v546_v3  ;;  %s1599_s9 = sld [smem:[#allocation29_spill]]  ;;  %s527_s13 = scalar_lea.vmem [#allocation9], %s1461_s12 }
  0x5b   : > { %s929_s29 = sshll.u32 %s536_s22, 4  ;;  %932 = vmatpush.msra.mxu2 %v545_v4  ;;  %s1600_s25 = sld [smem:[#allocation19_spill]] }
  0x5c   : > { %s544_s24 = scalar_lea.vmem %s1561_s4, %s929_s29  ;;  %594 = vmatpush.msra.mxu0 %v545_v4  ;;  %919 = vmatmul.msk.f32.vlgmr.msra.gmra.mxu2 %vm572_vm0, %v569_v5  ;;  %s1601_s11 = sld [smem:[#allocation28_spill]] }
  0x5d   : > { %v603_v7 = vld [vmem:[%s544_s24 + $0x8] sm:$0xff]  ;;  %918 = vmatmul.msk.f32.vlgmr.msra.gmra.mxu0 %vm572_vm0, %v568_v6  ;;  %v602_v8 = vld [vmem:[%s544_s24] sm:$0xff]  ;;  %s676_s24 = sshll.u32 %s527_s13, 4  ;;  %s657_s26 = scalar_lea.sflag [#allocation5], %s1449_s0  ;;  %s677_s24 = int_to_ptr.vmem [resolvable:$true] %s676_s24 }
  0x5e   : > { %611 = vperm.xlu0 %1030, %v603_v7   ;;  %s539_s21 = scalar_lea.vmem %s1598_s5, %s929_s29  ;;  %s1602_s29 = sld [smem:[#allocation30_spill]] }
  0x5f   : > { %v548_v9 = vld [vmem:[%s539_s21 + $0x8] sm:$0xff]  ;;  %v547_v10 = vld [vmem:[%s539_s21] sm:$0xff] }
  0x60   : > { %556 = vperm.xlu1 %1031, %v548_v9   ;;  %v623_v11 = vld [vmem:[%s1599_s9] sm:$0xff] }
  0x61   : > { %626 = vperm.xlu2 %1032, %v623_v11   ;;  %s1490_s7 = sadd.s32 %s1600_s25, %s923_s3 }
  0x62   : > { %v622_v28 = vld [vmem:[%s1601_s11] sm:$0xff]  ;;  %s924_s6 = sshll.u32 %s1490_s7, 3 }
  0x64   : > { %s674_s20 = scalar_lea.hbm %s1602_s29, %s924_s6  ;;  %s1147_s9 = scalar_lea.hbm %s1602_s29, 32 }
  0x65   : > { %s678_s17 = sshll.u32 %s674_s20, 4  ;;  %s679_s17 = int_to_ptr.hbm [resolvable:$true] %s678_s17 }
  0x66   : > { %606 = vperm.xlu0 %1030, %v602_v8   ;;  %s1141_s5 = sshra.s32 %s679_s17, 4  ;;  %s1142_s5 = int_to_ptr.hbm [resolvable:$true] %s1141_s5 }
  0x67   : > { %s1143_s21 = scalar_lea.hbm %s1142_s5, 8  ;;  %p1148_p10 = scmp.lt.s32.totalorder %s1142_s5, %s1602_s29 }
  0x68   : > { %551 = vperm.xlu1 %1031, %v547_v10   ;;  %p1144_p6 = scmp.ne.s32.totalorder %s1142_s5, %s1143_s21  ;;  %p1149_p11 = scmp.lt.s32.totalorder %s1147_s9, %s1143_s21 }
  0x6a   : > { %p1145_p7 = pnand %p1144_p6, %p1395_p9  ;;  %p1150_p12 = por %p1149_p11, %p1148_p10 }
  0x6c   : > { %p1146_p8 = pneg %p1145_p7 }
  0x6e   : > { %p1151_p0 = pnand %p1150_p12, %p1146_p8 }
  0xd0   : > { %v612_v12 = vpop.permute.xlu0 %611 }
  0xd2   : > { %v557_v29 = vpop.permute.xlu1 %556 }
  0xd3   : > { %v560_v30 = vadd.f32 %v557_v29, %v546_v3 }
  0xd5   : > { %v562_v31 = vmul.f32 0.5, %v560_v30 }
  0xd8   : > { %v607_v20 = vpop.permute.xlu0 %606 }
  0xda   : > { %v596_v15 = vpop.f32.mrf.mxu0  ;;  %v552_v32 = vpop.permute.xlu1 %551 }
  0xdb   : > { %v597_v18 = vadd.f32 %v596_v15, %v570_v14  ;;  %v559_v33 = vadd.f32 %v552_v32, %v545_v4 }
  0xdd   : > { %v614_v22 = vadd.f32 %v607_v20, %v597_v18 }
  0xdf   : > { %v599_v16 = vpop.f32.mrf.mxu2 }
  0xe0   : > { %v600_v17 = vadd.f32 %v599_v16, %v571_v13 }
  0xe2   : > { %v615_v19 = vadd.f32 %v612_v12, %v600_v17 }
  0xe4   : > { %v617_v21 = vmul.f32 0.5, %v615_v19 }
  0xe6   : > { %1033 = vtanh.f32 %v617_v21 }
  0xe7   : > { %1035 = vtanh.f32 %v614_v22 }
  0xe8   : > { %1037 = vtanh.f32 %v562_v31 }
  0xe9   : > { %1039 = vtanh.f32 %v559_v33 }
  0xec   : > { %v1034_v23 = vpop.eup %1033 }
  0xed   : > { %v619_v24 = vadd.f32 1.0, %v1034_v23  ;;  %v1036_v26 = vpop.eup %1035 }
  0xee   : > { %v1038_v34 = vpop.eup %1037 }
  0xef   : > { %v620_v25 = vmul.f32 0.5, %v619_v24  ;;  %v564_v35 = vadd.f32 1.0, %v1038_v34  ;;  %v1040_v37 = vpop.eup %1039 }
  0xf1   : > { %v621_v27 = vmul.f32 %v1036_v26, %v620_v25  ;;  %v565_v36 = vmul.f32 0.5, %v564_v35 }
  0xf3   : > { %648 = vmatpush.msra.mxu1 %v621_v27  ;;  %v566_v38 = vmul.f32 %v1040_v37, %v565_v36 }
  0xf4   : > { %920 = vmatmul.msk.f32.vlgmr.msra.gmra.mxu1 %vm629_vm1, %v622_v28 }
  0xf5   : > { %567 = vst [vmem:[%s527_s13] sm:$0xff] %v566_v38 }
  0xf6   : > { %1154 = shalt.err (!%p1151_p0)
}
  0xf7   : > { %941 = dma.vmem_to_hbm [thread:$0]  (%p1395_p9), %s677_s24, 128, %s679_s17, %s657_s26   ;;  %v627_v39 = vpop.permute.xlu2 %626  ;;  %v653_v41 = vld [vmem:[%s470_s23] sm:$0xff] }
  0xf8   : > { %s1604_s3 = sld [smem:[#allocation31_spill]]  ;;  %s534_s22 = scalar_lea.vmem [#allocation10], %s1461_s12 }
  0xf9   : > { %s692_s20 = sshll.u32 %s534_s22, 4  ;;  %s662_s5 = scalar_lea.sflag [#allocation11], %s1449_s0  ;;  %s693_s20 = int_to_ptr.vmem [resolvable:$true] %s692_s20 }
  0xfe   : > { %s690_s19 = scalar_lea.hbm %s1604_s3, %s924_s6  ;;  %s1175_s23 = scalar_lea.hbm %s1604_s3, 32 }
  0xff   : > { %s694_s13 = sshll.u32 %s690_s19, 4  ;;  %s695_s13 = int_to_ptr.hbm [resolvable:$true] %s694_s13 }
 0x100   : > { %s1169_s24 = sshra.s32 %s695_s13, 4  ;;  %s1170_s24 = int_to_ptr.hbm [resolvable:$true] %s1169_s24 }
 0x101   : > { %s1171_s7 = scalar_lea.hbm %s1170_s24, 8  ;;  %p1176_p5 = scmp.lt.s32.totalorder %s1170_s24, %s1604_s3 }
 0x102   : > { %p1172_p2 = scmp.ne.s32.totalorder %s1170_s24, %s1171_s7  ;;  %p1177_p3 = scmp.lt.s32.totalorder %s1175_s23, %s1171_s7 }
 0x104   : > { %p1173_p1 = pnand %p1172_p2, %p1395_p9  ;;  %p1178_p6 = por %p1177_p3, %p1176_p5 }
 0x106   : > { %p1174_p4 = pneg %p1173_p1 }
 0x108   : > { %p1179_p7 = pnand %p1178_p6, %p1174_p4 }
 0x171   : > { %v650_v40 = vpop.f32.mrf.mxu1 }
 0x172   : > { %v651_v42 = vadd.f32 %v650_v40, %v627_v39 }
 0x174   : > { %v654_v43 = vadd.f32 %v653_v41, %v651_v42 }
 0x176   : > { %655 = vst [vmem:[%s534_s22] sm:$0xff] %v654_v43 }
 0x177   : > { %1182 = shalt.err (!%p1179_p7)
}
 0x178   : > { %942 = dma.vmem_to_hbm [thread:$0]  (%p1395_p9), %s693_s20, 128, %s695_s13, %s662_s5  }
 0x179 PF: > { %s1605_s0 = sld [smem:[#allocation17_spill]]  ;;  %p958_p8 = scmp.ge.s32.totalorder %s1265_s16, 2 }
 0x17b   : > { %p950_p10 = pnand %p958_p8, %p1402_p13 }
 0x17d   : > { %p951_p11 = pneg %p950_p10 }
 0x17f   : > { %s706_s28 = sand.u32 1, %s1605_s0  }
 0x180   : > { %s707_s30 = scalar_lea.sflag [#allocation5], %s706_s28 }
 0x181   : > { %1228 = dma.done.wait (%p951_p11), %s707_s30, 128  }
 0x182   : > { %1230 = vsyncadd (%p951_p11), %s707_s30, 4294967168  ;;  %s717_s9 = scalar_lea.sflag [#allocation11], %s706_s28 }
 0x183   : > { %1232 = dma.done.wait (%p951_p11), %s717_s9, 128  }
 0x184   : > { %1234 = vsyncadd (%p951_p11), %s717_s9, 4294967168  ;;  %s32_s16 = sadd.s32 1, %s1265_s16   ;;  %s1607_s18 = sld [smem:[#allocation18_spill]] }
 0x185   : > { %p29_p12 = scmp.ge.s32.totalorder %s32_s16, 6   ;;  %s1608_s11 = sld [smem:[#allocation24_spill]] }
 0x186   : > { %s1609_s25 = sld [smem:[#allocation20_spill]]  ;;  %s1611_s30 = smov %s1241_s10 }
 0x187   : > { %s1610_s27 = sld [smem:[#allocation21_spill]]  ;;  %s1613_s12 = smov %s1257_s14 }
 0x188   : > { %s1614_s13 = smov %s1261_s15 }
 0x189   :  { %31 = sbr.rel (!%p29_p12) target bundleno = 19 (0x13), region = 183 }
 0x18a   : > { %s1612_s10 = smov %s1607_s18 }
 0x18c   : > { %s1615_s14 = smov %s1609_s25 }
 0x18d   : > { %s1616_s15 = smov %s1610_s27 }
 0x18e   :  { %723 = vsyncpa [#allocation4], 1 }
 0x18f   :  { %725 = vsyncpa [#allocation4 + $0x1], 1 }
 0x190   :  { %726 = vsyncpa [#allocation7], 1 }
 0x191   :  { %728 = vsyncpa [#allocation7 + $0x1], 1 }
 0x192   :  { %729 = vsyncpa [#allocation5], 1 }
 0x193   :  { %731 = vsyncpa [#allocation5 + $0x1], 1 }
 0x194   :  { %732 = vsyncpa [#allocation11], 1 }
 0x195   :  { %734 = vsyncpa [#allocation11 + $0x1], 1 }

</bundles_post_ra>
